<compile_context>
chip_gen: v6e
topology: v6e:2x2x1
jax: 0.10.0
libtpu: 0.0.40
codegen_flags: <defaults>
</compile_context>

<pallas_src>
import functools
import math

import jax
import jax.numpy as jnp
import numpy as np
from jax.experimental import pallas as pl
from jax.experimental.pallas import tpu as pltpu


# ----------------------------------------------------------------------------
# Tile / VMEM budgeting helpers (conservative for v7x's 64 MiB VMEM).
# ----------------------------------------------------------------------------
_TILE_BUDGET = 24 * 1024 * 1024   # target working-set per kernel step


def _vmem_limit(estimate_bytes):
    return int(min(64 * 1024 * 1024, max(2 * estimate_bytes + (16 << 20), 32 << 20)))


def _pick_tile_c(C, N, D):
    # widest class tile (lane-dense, MXU-friendly) that divides C and fits VMEM
    for tc in (512, 256, 128):
        if C % tc == 0:
            need = 2 * (D * tc * 4 + 2 * N * tc * 4) + N * D * 2
            if need <= _TILE_BUDGET:
                return tc
    return C  # small / odd class count: single full-width tile


def _pick_tile_n(N, C):
    # largest row tile that divides N, is sublane-aligned (or == N) and fits VMEM
    candidates = [n for n in range(N, 0, -1) if N % n == 0 and (n % 8 == 0 or n == N)]
    for tn in candidates:
        if 2 * 2 * tn * C * 4 + 2 * tn * 4 <= _TILE_BUDGET:
            return tn
    return candidates[-1]
    # TODO(synk): for extremely large C (C*8*4 bytes > budget) a two-pass
    # C-tiled reduction with a VMEM scratch accumulator would be needed.


# ----------------------------------------------------------------------------
# Kernel 1: cos_theta = clip(l2norm(emb) @ l2norm(W, axis=0), -1, 1)
#           origin    = cos_theta * scale      (fused second output)
# ----------------------------------------------------------------------------
def _cos_theta_kernel(embn_ref, w_ref, cos_ref, origin_ref, *, scale):
    # embn_ref: (N, D) bf16, row-normalized in the wrapper (hoisted: done once,
    #           not per C tile; also keeps the "parallel" grid axis safe since
    #           no per-core scratch init is required).
    # w_ref:    (D, TC) f32 raw classifier columns for this class tile.
    w = w_ref[...]
    # Normalize the columns AFTER the matmul: TC rsqrts (EUP) + N*TC muls
    # instead of D*TC f32 divides, and the MXU gets a raw bf16 tile.
    inv_wn = jax.lax.rsqrt(jnp.maximum(jnp.sum(w * w, axis=0, keepdims=True), 1e-12))
    cos = jnp.dot(embn_ref[...], w.astype(jnp.bfloat16),
                  preferred_element_type=jnp.float32)
    cos = jnp.clip(cos * inv_wn, -1.0, 1.0)
    cos_ref[...] = cos
    origin_ref[...] = cos * scale            # origin_cos * scale, fused here


def compute_cos_theta(emb_n_bf16, weight, scale, tile_c=None):
    N, D = emb_n_bf16.shape
    Dw, C = weight.shape
    assert D == Dw
    if tile_c is None:
        tile_c = _pick_tile_c(C, N, D)
    assert C % tile_c == 0
    est = 2 * (D * tile_c * 4 + 2 * N * tile_c * 4) + N * D * 2
    kern = functools.partial(_cos_theta_kernel, scale=scale)
    return pl.pallas_call(
        kern,
        out_shape=(
            jax.ShapeDtypeStruct((N, C), jnp.float32),   # cos_theta
            jax.ShapeDtypeStruct((N, C), jnp.float32),   # origin_cos * scale
        ),
        grid_spec=pltpu.PrefetchScalarGridSpec(
            num_scalar_prefetch=0,
            grid=(C // tile_c,),
            in_specs=[
                pl.BlockSpec((N, D), lambda j: (0, 0)),       # resident emb
                pl.BlockSpec((D, tile_c), lambda j: (0, j)),  # weight tile
            ],
            out_specs=[
                pl.BlockSpec((N, tile_c), lambda j: (0, j)),
                pl.BlockSpec((N, tile_c), lambda j: (0, j)),
            ],
        ),
        compiler_params=pltpu.CompilerParams(
            dimension_semantics=("parallel",),
            vmem_limit_bytes=_vmem_limit(est)),
    )(emb_n_bf16, weight)


# ----------------------------------------------------------------------------
# Kernel 2: Cifp elementwise / row-reduction logic, tiled over N.
# ----------------------------------------------------------------------------
def _cifp_kernel(cos_ref, lab_ref, th_ref, out_ref, *, scale, margin):
    cos = cos_ref[...]                                   # (TN, C) f32
    lab = lab_ref[...]                                   # (TN, 1) i32
    th = th_ref[0]                                       # scalar f32 from SMEM

    n, c = cos.shape
    col = jax.lax.broadcasted_iota(jnp.int32, (n, c), 1)
    is_target = col == lab                               # one-hot mask (scatter_ of 1.0)
    maskf = is_target.astype(cos.dtype)

    tmp = cos - 2.0 * maskf                              # tmp_cos_theta
    target = jnp.sum(jnp.where(is_target, cos, 0.0), axis=1, keepdims=True)
    target_m = target - margin

    topk_mask = tmp > target
    cond = jnp.logical_and(jnp.logical_not(topk_mask), tmp > th)

    # (where(cond, tmp, 0))**2 == where(cond, tmp*tmp, 0); the torch
    # where(cond2, ., _) branch is numerically identical in the forward pass
    # since kernel.detach() only changes gradients.
    neg2 = jnp.where(cond, tmp * tmp, 0.0)
    # Count strictly-positive squared entries (exact original Cifp semantics;
    # differs from counting `cond` only when tmp == 0 exactly).
    times = jnp.sum((neg2 > 0.0).astype(cos.dtype), axis=1, keepdims=True)
    times = jnp.maximum(times, 1.0)
    neg_mean = jnp.sum(neg2, axis=1, keepdims=True) / times   # per-row divide: negligible

    target_m = target_m - (1.0 + target) * neg_mean
    out_ref[...] = jnp.where(is_target, target_m, cos) * scale


def cifp_postprocess(cos_theta, label_col, neg_th_arr, scale, margin, tile_n=None):
    N, C = cos_theta.shape
    if tile_n is None:
        tile_n = _pick_tile_n(N, C)
    assert N % tile_n == 0
    est = 2 * 2 * tile_n * C * 4 + 2 * tile_n * 4
    kern = functools.partial(_cifp_kernel, scale=scale, margin=margin)
    return pl.pallas_call(
        kern,
        out_shape=jax.ShapeDtypeStruct((N, C), jnp.float32),
        grid_spec=pltpu.PrefetchScalarGridSpec(
            num_scalar_prefetch=0,
            grid=(N // tile_n,),
            in_specs=[
                pl.BlockSpec((tile_n, C), lambda i: (i, 0)),
                pl.BlockSpec((tile_n, 1), lambda i: (i, 0)),
                pl.BlockSpec(memory_space=pltpu.MemorySpace.SMEM),   # scalar threshold
            ],
            out_specs=pl.BlockSpec((tile_n, C), lambda i: (i, 0)),
        ),
        compiler_params=pltpu.CompilerParams(
            dimension_semantics=("parallel",),
            vmem_limit_bytes=_vmem_limit(est)),
    )(cos_theta, label_col, neg_th_arr)


# ----------------------------------------------------------------------------
# On-device threshold selection (replaces host sync + full sort).
# ----------------------------------------------------------------------------
def _select_neg_threshold(cos_theta, label):
    N, C = cos_theta.shape
    far = 1e-4
    mask = jax.nn.one_hot(label, C, dtype=cos_theta.dtype)
    tmp = cos_theta - 2.0 * mask
    target = jnp.sum(cos_theta * mask, axis=1, keepdims=True)
    topk_mask = tmp > target
    # TODO(synk): dist.all_reduce(topk_sum) / all_gather of the top-k values are
    # identity for world_size == 1; a multi-host version needs a psum + gather.
    topk_sum = jnp.sum(topk_mask.astype(jnp.int32))
    total = N * (C - 1)
    k_max = max(1, math.ceil(far * total))                        # static upper bound
    far_rank = jnp.ceil(far * (total - topk_sum).astype(jnp.float32)).astype(jnp.int32)
    far_rank = jnp.clip(far_rank, 1, k_max)
    flat = (tmp - 2.0 * topk_mask.astype(cos_theta.dtype)).reshape(-1)
    topk_vals = jax.lax.top_k(flat, k_max)[0]                     # descending
    neg_th = jax.lax.dynamic_index_in_dim(topk_vals, far_rank - 1, keepdims=False)
    return neg_th


# ----------------------------------------------------------------------------
# Full forward (world_size == 1).  Fully jittable (no host sync).
# ----------------------------------------------------------------------------
def cifp_forward(embeddings, weight, label, scale=64.0, margin=0.35):
    N, D = embeddings.shape
    Dw, C = weight.shape
    assert D == Dw

    # Hoisted row-normalization (done once instead of per C tile); bf16 MXU feed.
    emb = embeddings.astype(jnp.float32)
    inv_en = jax.lax.rsqrt(jnp.maximum(jnp.sum(emb * emb, axis=1, keepdims=True), 1e-12))
    emb_n = (emb * inv_en).astype(jnp.bfloat16)

    # Hot path 1: normalized matmul on the MXU (+ fused origin = cos * scale).
    cos_theta, origin = compute_cos_theta(emb_n, weight.astype(jnp.float32), scale)

    # Data-dependent threshold, selected entirely on device.
    neg_th = _select_neg_threshold(cos_theta, label)

    # Hot path 2: per-(N, C) elementwise + row reductions, tiled over N.
    label_col = label.reshape(-1, 1).astype(jnp.int32)
    neg_th_arr = jnp.reshape(neg_th, (1,)).astype(jnp.float32)
    out = cifp_postprocess(cos_theta, label_col, neg_th_arr, scale, margin)
    return out, origin, cos_theta, neg_th


# ----------------------------------------------------------------------------
# Pure-JAX references (sanity checks only).
# ----------------------------------------------------------------------------
def _cos_theta_ref(embeddings, weight):
    e = embeddings / jnp.linalg.norm(embeddings, axis=1, keepdims=True)
    w = weight / jnp.linalg.norm(weight, axis=0, keepdims=True)
    return jnp.clip(e @ w, -1.0, 1.0)


def _postprocess_ref(cos_theta, label, neg_th, scale, margin):
    N, C = cos_theta.shape
    mask = jax.nn.one_hot(label, C, dtype=cos_theta.dtype)
    tmp = cos_theta - 2.0 * mask
    target = jnp.sum(cos_theta * mask, axis=1, keepdims=True)
    target_m = target - margin
    topk_mask = tmp > target
    cond = jnp.logical_and(jnp.logical_not(topk_mask), tmp > neg_th)
    neg = jnp.where(cond, tmp, 0.0) ** 2
    times = jnp.sum((neg > 0).astype(cos_theta.dtype), axis=1, keepdims=True)
    times = jnp.where(times > 0, times, jnp.ones_like(times))
    neg_mean = jnp.sum(neg, axis=1, keepdims=True) / times
    target_m = target_m - (1.0 + target) * neg_mean
    out = jnp.where(mask > 0, target_m, cos_theta) * scale
    return out, cos_theta * scale


if __name__ == "__main__":
    N, D, C = 8, 32, 128  # batch, in_features, out_features
    key = jax.random.PRNGKey(0)
    k1, k2, k3 = jax.random.split(key, 3)

    embeddings = jax.random.normal(k1, (N, D), dtype=jnp.float32)
    # nn.init.normal_(self.kernel, std=0.01), shape (in_features, out_features)
    weight = jax.random.normal(k2, (D, C), dtype=jnp.float32) * 0.01
    label = jax.random.randint(k3, (N,), 0, C, dtype=jnp.int32)

    fwd = jax.jit(functools.partial(cifp_forward, scale=64.0, margin=0.35))
    out, origin, cos_theta, neg_th = fwd(embeddings, weight, label)
    jax.block_until_ready((out, origin, cos_theta, neg_th))

    # --- sanity checks ------------------------------------------------------
    # 1) cos_theta vs f32 reference (bf16 MXU inputs => relaxed tolerance)
    ref_cos = _cos_theta_ref(embeddings, weight)
    np.testing.assert_allclose(np.asarray(cos_theta), np.asarray(ref_cos),
                               rtol=0, atol=1e-2)

    # 2) post-processing (same cos_theta / neg_th fed to kernel and reference)
    ref_out, ref_origin = _postprocess_ref(cos_theta, label, neg_th, 64.0, 0.35)
    np.testing.assert_allclose(np.asarray(out), np.asarray(ref_out),
                               rtol=1e-5, atol=5e-4)
    np.testing.assert_allclose(np.asarray(origin), np.asarray(ref_origin),
                               rtol=1e-6, atol=1e-5)

    # 3) threshold selection vs sort-based reference (same cos_theta)
    cos_np = np.asarray(cos_theta)
    lab_np = np.asarray(label)
    mask_np = np.zeros_like(cos_np)
    mask_np[np.arange(N), lab_np] = 1.0
    tmp_np = cos_np - 2.0 * mask_np
    tgt_np = cos_np[np.arange(N), lab_np][:, None]
    topk_np = tmp_np > tgt_np
    far = 1e-4
    far_rank_ref = max(1, math.ceil(far * (N * (C - 1) - int(topk_np.sum()))))
    flat_sorted = np.sort((tmp_np - 2.0 * topk_np.astype(np.float32)).reshape(-1))[::-1]
    np.testing.assert_allclose(float(neg_th), float(flat_sorted[far_rank_ref - 1]),
                               rtol=0, atol=1e-6)

    assert out.shape == (N, C) and origin.shape == (N, C)
    assert bool(jnp.all(jnp.isfinite(out))) and bool(jnp.all(jnp.isfinite(origin)))

    print("KERNEL_OK")
</pallas_src>

<mosaic_0001>
module attributes {stable_mosaic.version = 11 : i64} {
  func.func @_cos_theta_kernel(%arg0: i32, %arg1: memref<8x32xbf16, #tpu.memory_space<vmem>>, %arg2: memref<32x128xf32, #tpu.memory_space<vmem>>, %arg3: memref<8x128xf32, #tpu.memory_space<vmem>>, %arg4: memref<8x128xf32, #tpu.memory_space<vmem>>) attributes {dimension_semantics = [#tpu.dimension_semantics<parallel>], iteration_bounds = array<i64: 1>, scalar_prefetch = 0 : i64, scratch_operands = 0 : i64, tpu.core_type = #tpu.core_type<tc>, window_params = [{pipeline_mode = #tpu.pipeline_mode<synchronous>, transform_indices = @transform_0, window_bounds = array<i64: 8, 32>}, {transform_indices = @transform_1, window_bounds = array<i64: 32, 128>}, {transform_indices = @transform_2, window_bounds = array<i64: 8, 128>}, {transform_indices = @transform_3, window_bounds = array<i64: 8, 128>}]} {
    %c0 = arith.constant 0 : index
    %c0_0 = arith.constant 0 : index
    %0 = vector.load %arg2[%c0, %c0_0] : memref<32x128xf32, #tpu.memory_space<vmem>>, vector<32x128xf32>
    %1 = arith.mulf %0, %0 : vector<32x128xf32>
    %cst = arith.constant dense<0.000000e+00> : vector<128xf32>
    %2 = vector.multi_reduction <add>, %1, %cst [0] : vector<32x128xf32> to vector<128xf32>
    %3 = vector.shape_cast %2 : vector<128xf32> to vector<1x128xf32>
    %cst_1 = arith.constant 9.99999996E-13 : f32
    %4 = vector.broadcast %cst_1 : f32 to vector<1x128xf32>
    %5 = arith.maximumf %3, %4 : vector<1x128xf32>
    %6 = math.rsqrt %5 : vector<1x128xf32>
    %c0_2 = arith.constant 0 : index
    %c0_3 = arith.constant 0 : index
    %7 = vector.load %arg1[%c0_2, %c0_3] : memref<8x32xbf16, #tpu.memory_space<vmem>>, vector<8x32xbf16>
    %8 = arith.truncf %0 : vector<32x128xf32> to vector<32x128xbf16>
    %cst_4 = arith.constant dense<0.000000e+00> : vector<8x128xf32>
    %9 = tpu.matmul %7, %8, %cst_4 {dimension_numbers = #tpu.dot_dimension_numbers<[1], [0], [0], [1], [0, 0, 1, 1], [], []>} : vector<8x32xbf16>, vector<32x128xbf16>, vector<8x128xf32> -> vector<8x128xf32>
    %10 = vector.broadcast %6 : vector<1x128xf32> to vector<8x128xf32>
    %11 = arith.mulf %9, %10 : vector<8x128xf32>
    %cst_5 = arith.constant -1.000000e+00 : f32
    %cst_6 = arith.constant 1.000000e+00 : f32
    %12 = vector.broadcast %cst_5 : f32 to vector<8x128xf32>
    %13 = arith.maximumf %12, %11 : vector<8x128xf32>
    %14 = vector.broadcast %cst_6 : f32 to vector<8x128xf32>
    %15 = arith.minimumf %14, %13 : vector<8x128xf32>
    %c0_7 = arith.constant 0 : index
    %c0_8 = arith.constant 0 : index
    %16 = vector.load %arg3[%c0_7, %c0_8] : memref<8x128xf32, #tpu.memory_space<vmem>>, vector<8x128xf32>
    tpu.vector_store %arg3[%c0_7, %c0_8], %15 {strides = array<i32>} : memref<8x128xf32, #tpu.memory_space<vmem>>, vector<8x128xf32>,
    %cst_9 = arith.constant 6.400000e+01 : f32
    %17 = vector.broadcast %cst_9 : f32 to vector<8x128xf32>
    %18 = arith.mulf %15, %17 : vector<8x128xf32>
    %c0_10 = arith.constant 0 : index
    %c0_11 = arith.constant 0 : index
    %19 = vector.load %arg4[%c0_10, %c0_11] : memref<8x128xf32, #tpu.memory_space<vmem>>, vector<8x128xf32>
    tpu.vector_store %arg4[%c0_10, %c0_11], %18 {strides = array<i32>} : memref<8x128xf32, #tpu.memory_space<vmem>>, vector<8x128xf32>,
    return
  }
  func.func @transform_0(%arg0: i32) -> (i32, i32) {
    %c0_i32 = arith.constant 0 : i32
    %c0_i32_0 = arith.constant 0 : i32
    %c0_i32_1 = arith.constant 0 : i32
    return %c0_i32, %c0_i32_0 : i32, i32
  }
  func.func @transform_1(%arg0: i32) -> (i32, i32) {
    %c0_i32 = arith.constant 0 : i32
    %c0_i32_0 = arith.constant 0 : i32
    return %c0_i32, %arg0 : i32, i32
  }
  func.func @transform_2(%arg0: i32) -> (i32, i32) {
    %c0_i32 = arith.constant 0 : i32
    %c0_i32_0 = arith.constant 0 : i32
    return %c0_i32, %arg0 : i32, i32
  }
  func.func @transform_3(%arg0: i32) -> (i32, i32) {
    %c0_i32 = arith.constant 0 : i32
    %c0_i32_0 = arith.constant 0 : i32
    return %c0_i32, %arg0 : i32, i32
  }
}

module attributes {stable_mosaic.version = 11 : i64} {
  func.func @_cifp_kernel(%arg0: i32, %arg1: memref<8x128xf32, #tpu.memory_space<vmem>>, %arg2: memref<8x1xi32, #tpu.memory_space<vmem>>, %arg3: memref<1xf32, #tpu.memory_space<smem>>, %arg4: memref<8x128xf32, #tpu.memory_space<vmem>>) attributes {dimension_semantics = [#tpu.dimension_semantics<parallel>], iteration_bounds = array<i64: 1>, scalar_prefetch = 0 : i64, scratch_operands = 0 : i64, tpu.core_type = #tpu.core_type<tc>, window_params = [{transform_indices = @transform_0, window_bounds = array<i64: 8, 128>}, {transform_indices = @transform_1, window_bounds = array<i64: 8, 1>}, {transform_indices = @transform_2, window_bounds = array<i64: 1>}, {transform_indices = @transform_3, window_bounds = array<i64: 8, 128>}]} {
    %c0 = arith.constant 0 : index
    %c0_0 = arith.constant 0 : index
    %0 = vector.load %arg1[%c0, %c0_0] : memref<8x128xf32, #tpu.memory_space<vmem>>, vector<8x128xf32>
    %c0_1 = arith.constant 0 : index
    %c0_2 = arith.constant 0 : index
    %1 = vector.load %arg2[%c0_1, %c0_2] : memref<8x1xi32, #tpu.memory_space<vmem>>, vector<8x1xi32>
    %c0_3 = arith.constant 0 : index
    %2 = memref.load %arg3[%c0_3] : memref<1xf32, #tpu.memory_space<smem>>
    %3 = tpu.iota {dimensions = array<i32: 1>} : vector<8x128xi32>
    %4 = vector.broadcast %1 : vector<8x1xi32> to vector<8x128xi32>
    %5 = arith.cmpi eq, %3, %4 : vector<8x128xi32>
    %6 = arith.extui %5 : vector<8x128xi1> to vector<8x128xi32>
    %7 = arith.sitofp %6 : vector<8x128xi32> to vector<8x128xf32>
    %cst = arith.constant 2.000000e+00 : f32
    %8 = vector.broadcast %cst : f32 to vector<8x128xf32>
    %9 = arith.mulf %8, %7 : vector<8x128xf32>
    %10 = arith.subf %0, %9 : vector<8x128xf32>
    %cst_4 = arith.constant 0.000000e+00 : f32
    %11 = vector.broadcast %cst_4 : f32 to vector<8x128xf32>
    %12 = arith.select %5, %0, %11 : vector<8x128xi1>, vector<8x128xf32>
    %cst_5 = arith.constant dense<0.000000e+00> : vector<8xf32>
    %13 = vector.multi_reduction <add>, %12, %cst_5 [1] : vector<8x128xf32> to vector<8xf32>
    %14 = vector.shape_cast %13 : vector<8xf32> to vector<8x1xf32>
    %cst_6 = arith.constant 3.500000e-01 : f32
    %15 = vector.broadcast %cst_6 : f32 to vector<8x1xf32>
    %16 = arith.subf %14, %15 : vector<8x1xf32>
    %17 = vector.broadcast %14 : vector<8x1xf32> to vector<8x128xf32>
    %18 = arith.cmpf ogt, %10, %17 : vector<8x128xf32>
    %cst_7 = arith.constant dense<true> : vector<8x128xi1>
    %19 = arith.xori %18, %cst_7 : vector<8x128xi1>
    %20 = vector.broadcast %2 : f32 to vector<8x128xf32>
    %21 = arith.cmpf ogt, %10, %20 : vector<8x128xf32>
    %22 = arith.andi %19, %21 : vector<8x128xi1>
    %23 = arith.mulf %10, %10 : vector<8x128xf32>
    %cst_8 = arith.constant 0.000000e+00 : f32
    %24 = vector.broadcast %cst_8 : f32 to vector<8x128xf32>
    %25 = arith.select %22, %23, %24 : vector<8x128xi1>, vector<8x128xf32>
    %cst_9 = arith.constant 0.000000e+00 : f32
    %26 = vector.broadcast %cst_9 : f32 to vector<8x128xf32>
    %27 = arith.cmpf ogt, %25, %26 : vector<8x128xf32>
    %28 = arith.extui %27 : vector<8x128xi1> to vector<8x128xi32>
    %29 = arith.sitofp %28 : vector<8x128xi32> to vector<8x128xf32>
    %cst_10 = arith.constant dense<0.000000e+00> : vector<8xf32>
    %30 = vector.multi_reduction <add>, %29, %cst_10 [1] : vector<8x128xf32> to vector<8xf32>
    %31 = vector.shape_cast %30 : vector<8xf32> to vector<8x1xf32>
    %cst_11 = arith.constant 1.000000e+00 : f32
    %32 = vector.broadcast %cst_11 : f32 to vector<8x1xf32>
    %33 = arith.maximumf %31, %32 : vector<8x1xf32>
    %cst_12 = arith.constant dense<0.000000e+00> : vector<8xf32>
    %34 = vector.multi_reduction <add>, %25, %cst_12 [1] : vector<8x128xf32> to vector<8xf32>
    %35 = vector.shape_cast %34 : vector<8xf32> to vector<8x1xf32>
    %36 = arith.divf %35, %33 : vector<8x1xf32>
    %cst_13 = arith.constant 1.000000e+00 : f32
    %37 = vector.broadcast %cst_13 : f32 to vector<8x1xf32>
    %38 = arith.addf %37, %14 : vector<8x1xf32>
    %39 = arith.mulf %38, %36 : vector<8x1xf32>
    %40 = arith.subf %16, %39 : vector<8x1xf32>
    %41 = vector.shape_cast %40 : vector<8x1xf32> to vector<8x1xf32>
    %42 = vector.broadcast %41 : vector<8x1xf32> to vector<8x128xf32>
    %43 = arith.select %5, %42, %0 : vector<8x128xi1>, vector<8x128xf32>
    %cst_14 = arith.constant 6.400000e+01 : f32
    %44 = vector.broadcast %cst_14 : f32 to vector<8x128xf32>
    %45 = arith.mulf %43, %44 : vector<8x128xf32>
    %c0_15 = arith.constant 0 : index
    %c0_16 = arith.constant 0 : index
    %46 = vector.load %arg4[%c0_15, %c0_16] : memref<8x128xf32, #tpu.memory_space<vmem>>, vector<8x128xf32>
    tpu.vector_store %arg4[%c0_15, %c0_16], %45 {strides = array<i32>} : memref<8x128xf32, #tpu.memory_space<vmem>>, vector<8x128xf32>,
    return
  }
  func.func @transform_0(%arg0: i32) -> (i32, i32) {
    %c0_i32 = arith.constant 0 : i32
    %c0_i32_0 = arith.constant 0 : i32
    return %arg0, %c0_i32 : i32, i32
  }
  func.func @transform_1(%arg0: i32) -> (i32, i32) {
    %c0_i32 = arith.constant 0 : i32
    %c0_i32_0 = arith.constant 0 : i32
    return %arg0, %c0_i32 : i32, i32
  }
  func.func @transform_2(%arg0: i32) -> i32 {
    %c0_i32 = arith.constant 0 : i32
    %c0_i32_0 = arith.constant 0 : i32
    return %c0_i32 : i32
  }
  func.func @transform_3(%arg0: i32) -> (i32, i32) {
    %c0_i32 = arith.constant 0 : i32
    %c0_i32_0 = arith.constant 0 : i32
    return %arg0, %c0_i32 : i32, i32
  }
}

</mosaic_0001>

<bundles_post_ra>
// kernel: cifp_forward.2
= control target key start
LH: loop header
LB: loop body
LE: loop exit
PB: predicated region body
PF: predicated region fallthrough
CT: control target
= control target key end

     0   :  { %9 = vsyncpa [#allocation3], 0  ;;  %s223_s0 = inlined_call_operand.vmem [shape: bf16[8,32], index: 0, kind: input, shape index: {}]   ;;  %s224_s1 = inlined_call_operand.hbm [shape: f32[32,128], index: 1, kind: input, shape index: {}]   ;;  %s225_s2 = inlined_call_operand.vmem [shape: f32[8,128], index: 2, kind: output, shape index: {0}]   ;;  %s226_s3 = inlined_call_operand.hbm [shape: f32[8,128], index: 3, kind: output, shape index: {1}]  }
   0x1   :  { %10 = vsyncpa [#allocation4], 0  ;;  %s185_s12 = smov [#allocation2]  }
   0x2   :  { %s18_s13 = sshll.u32 %s185_s12, 4  ;;  %s19_s13 = int_to_ptr.vmem [resolvable:$true] %s18_s13 }
   0x3   :  { %s149_s14 = scalar_lea.vmem %s19_s13, 512  ;;  %p154_p1 = scmp.lt.s32.totalorder %s19_s13, %s19_s13 }
   0x4   :  { %p150_p0 = scmp.ne.s32.totalorder %s19_s13, %s149_s14  ;;  %p155_p2 = scmp.lt.s32.totalorder %s149_s14, %s149_s14 }
   0x6   :  { %p156_p3 = por %p155_p2, %p154_p1 }
   0x8   :  { %p157_p4 = pnand %p156_p3, %p150_p0 }
   0xa   :  { %160 = shalt.err (!%p157_p4)
}
   0xb   :  { %s186_s15 = smov 128   ;;  %s187_s16 = smov 8  }
   0xc   :  { %24 = dma.hbm_to_vmem [thread:$0]  %s224_s1, 512, %s19_s13, [#allocation3], %s186_s15, %s186_s15, %s187_s16  }
   0xd   :  { %181 = dma.done.wait [#allocation3], 512  }
   0xe   :  { %182 = vsyncadd [#allocation3], 4294966784  ;;  %v188_v0 = vmov 0.0   ;;  %vm189_vm0 = vmmov 0   ;;  %v31_v1 = vld [vmem:[#allocation2 + $0x10] sm:$0xff]  ;;  %v32_v2 = vld [vmem:[#allocation2 + $0x18] sm:$0xff] }
   0xf   :  { %125 = vmatprep.subr.bf16.mxu0 %v188_v0  ;;  %129 = vmatprep.mubr.msk.bf16.mxu0 %vm189_vm0, %v188_v0  ;;  %v29_v3 = vld [vmem:[#allocation2] sm:$0xff]  ;;  %v50_v4 = vpack.c.bf16 %v32_v2, %v31_v1  ;;  %v30_v5 = vld [vmem:[#allocation2 + $0x8] sm:$0xff]  ;;  %v35_v7 = vmul.f32 %v31_v1, %v31_v1  ;;  %v36_v10 = vmul.f32 %v32_v2, %v32_v2  ;;  %vm51_vm1 = vcmask 261120   ;;  %s190_s20 = smov [#allocation5]  }
  0x10   :  { %v33_v6 = vmul.f32 %v29_v3, %v29_v3  ;;  %v34_v8 = vmul.f32 %v30_v5, %v30_v5  ;;  %v49_v9 = vpack.c.bf16 %v30_v5, %v29_v3  ;;  %v48_v13 = vld [vmem:[%s223_s0] sm:$0xf]  ;;  %s109_s21 = sshll.u32 %s190_s20, 4  ;;  %s110_s21 = int_to_ptr.vmem [resolvable:$true] %s109_s21 }
  0x11   :  { %126 = vmatpush3.bf16.msra.mxu0 %v50_v4  ;;  %s161_s23 = scalar_lea.vmem %s110_s21, 128  ;;  %p166_p6 = scmp.lt.s32.totalorder %s110_s21, %s110_s21 }
  0x12   :  { %127 = vmatprep.subr.bf16.mxu0 %v188_v0  ;;  %v37_v11 = vadd.f32 %v34_v8, %v33_v6  ;;  %p162_p5 = scmp.ne.s32.totalorder %s110_s21, %s161_s23  ;;  %p167_p7 = scmp.lt.s32.totalorder %s161_s23, %s161_s23 }
  0x14   :  { %v38_v12 = vadd.f32 %v37_v11, %v35_v7  ;;  %p168_p8 = por %p167_p7, %p166_p6 }
  0x15   :  { %128 = vmatpush3.bf16.msra.mxu0 %v49_v9 }
  0x16   :  { %v39_v14 = vadd.f32 %v38_v12, %v36_v10  ;;  %p169_p9 = pnand %p168_p8, %p162_p5 }
  0x18   :  { %130 = vmatmul.mubr.msk.bf16.vlgmr.msra.gmra.mxu0 %vm51_vm1, %v48_v13  ;;  %v40_v15 = vrot.slane %v39_v14, 4 }
  0x1a   :  { %v41_v16 = vadd.f32 %v40_v15, %v39_v14 }
  0x1c   :  { %v42_v17 = vrot.slane %v41_v16, 2 }
  0x1e   :  { %v43_v18 = vadd.f32 %v42_v17, %v41_v16 }
  0x20   :  { %v44_v19 = vrot.slane %v43_v18, 1 }
  0x22   :  { %v45_v20 = vadd.f32 %v44_v19, %v43_v18 }
  0x24   :  { %v46_v21 = vmax.f32 %v45_v20, 1e-12 }
  0x26   :  { %139 = vrsqrt.f32 %v46_v21 }
  0x33   :  { %v140_v22 = vpop.eup %139 }
  0xd8   :  { %v89_v23 = vpop.f32.mrf.mxu0 }
  0xd9   :  { %v95_v24 = vmul.f32 %v140_v22, %v89_v23 }
  0xda   :  { %v131_v25 = vpop.f32.mrf.mxu0 }
  0xdb   :  { %v121_v26 = vclamps-f32 %v95_v24, 1.0 }
  0xdc   :  { %v92_v27 = vpop.f32.mrf.mxu0 }
  0xdd   :  { %98 = vst [vmem:[%s225_s2] sm:$0xff] %v121_v26  ;;  %v99_v28 = vmul.f32 64.0, %v121_v26 }
  0xde   :  { %v132_v29 = vpop.f32.mrf.mxu0 }
  0xdf   :  { %100 = vst [vmem:[#allocation5] sm:$0xff] %v99_v28 }
  0xe0   :  { %172 = shalt.err (!%p169_p9)
}
  0xe1   :  { %112 = dma.vmem_to_hbm [thread:$0]  %s110_s21, 128, %s226_s3, [#allocation4]  }
  0xe2   :  { %183 = dma.done.wait [#allocation4], 128  }
  0xe3   :  { %184 = vsyncadd [#allocation4], 4294967168 }
  0xe4   :  { %118 = vsyncpa [#allocation3], 1 }
  0xe5   :  { %119 = vsyncpa [#allocation4], 1 }

// kernel: cifp_forward.3
= control target key start
LH: loop header
LB: loop body
LE: loop exit
PB: predicated region body
PF: predicated region fallthrough
CT: control target
= control target key end

     0   :  { %s141_s0 = inlined_call_operand.vmem [shape: f32[8,128], index: 0, kind: input, shape index: {}]   ;;  %s142_s1 = inlined_call_operand.vmem [shape: s32[8,1], index: 1, kind: input, shape index: {}]   ;;  %s143_s2 = inlined_call_operand.<no memory space> [shape: f32[1], index: 2, kind: input, shape index: {}]   ;;  %s144_s3 = inlined_call_operand.hbm [shape: f32[8,128], index: 3, kind: output, shape index: {}]  }
   0x1   :  { %v17_v0 = vld [vmem:[%s142_s1] sm:$0xff] }
   0x2   :  { %9 = vsyncpa [#allocation4], 0  ;;  %v102_v1 = vmov 0   ;;  %v19_v2 = vlaneseq  ;;  %v16_v4 = vld [vmem:[%s141_s0] sm:$0xff]  ;;  %v103_v7 = vmov 0.0   ;;  %v35_v11 = vstv %s143_s2  ;;  %s105_s0 = smov [#allocation3]  }
   0x3   :  { %77 = vset.pattern.permute.xlu0 %v102_v1  ;;  %vm104_vm2 = vmmov 1   ;;  %s62_s2 = sshll.u32 %s105_s0, 4  ;;  %s63_s2 = int_to_ptr.vmem [resolvable:$true] %s62_s2 }
   0x4   :  { %22 = vperm.xlu0 %77, %v17_v0   ;;  %v20_v3 = vand.u32 127, %v19_v2  ;;  %s80_s17 = scalar_lea.vmem %s63_s2, 128  ;;  %p85_p1 = scmp.lt.s32.totalorder %s63_s2, %s63_s2 }
   0x5   :  { %p81_p0 = scmp.ne.s32.totalorder %s63_s2, %s80_s17  ;;  %p86_p2 = scmp.lt.s32.totalorder %s80_s17, %s80_s17 }
   0x7   :  { %p87_p3 = por %p86_p2, %p85_p1 }
   0x9   :  { %p88_p4 = pnand %p87_p3, %p81_p0 }
  0x7f   :  { %v23_v5 = vpop.permute.xlu0 %22 }
  0x80   :  { %vm24_vm0 = vcmp.eq.s32.totalorder %v20_v3, %v23_v5 }
  0x81   :  { %v29_v6 = vsel %vm24_vm0, %v16_v4, 0.0  ;;  %v70_v8 = vsel %vm24_vm0, 1.0, %v103_v7 }
  0x82   :  { %30 = vadd.xlane.f32.xlu0 %v29_v6  ;;  %v27_v9 = vmul.f32 2.0, %v70_v8 }
  0x84   :  { %v28_v10 = vsub.f32 %v16_v4, %v27_v9 }
  0x86   :  { %vm36_vm4 = vcmp.gt.f32.partialorder %v28_v10, %v35_v11  ;;  %v38_v13 = vmul.f32 %v28_v10, %v28_v10 }
 0x10b   :  { %v31_v12 = vpop.xlane.xlu0 %30 }
 0x10c   :  { %vm33_vm1 = vcmp.gt.f32.partialorder %v28_v10, %v31_v12  ;;  %v50_v20 = vadd.f32 1.0, %v31_v12  ;;  %v71_v22 = vadd.f32 -0.35, %v31_v12 }
 0x10d   :  { %vm34_vm3 = vmxor %vm33_vm1, %vm104_vm2 }
 0x10e   :  { %vm37_vm5 = vmand %vm34_vm3, %vm36_vm4 }
 0x10f   :  { %v39_v14 = vsel %vm37_vm5, %v38_v13, 0.0 }
 0x110   :  { %vm40_vm6 = vcmp.gt.f32.partialorder %v39_v14, 0.0 }
 0x111   :  { %v72_v15 = vsel %vm40_vm6, 1.0, %v103_v7 }
 0x112   :  { %43 = vadd.xlane.f32.xlu1 %v72_v15 }
 0x116   :  { %46 = vadd.xlane.f32.xlu1 %v39_v14 }
 0x19b   :  { %v44_v16 = vpop.xlane.xlu1 %43 }
 0x19c   :  { %v45_v17 = vmax.f32 %v44_v16, 1.0 }
 0x19e   :  { %78 = vrcp.f32 %v45_v17 }
 0x19f   :  { %v47_v19 = vpop.xlane.xlu1 %46 }
 0x1ab   :  { %v79_v18 = vpop.eup %78 }
 0x1ac   :  { %v49_v21 = vmul.f32 %v79_v18, %v47_v19 }
 0x1ae   :  { %v51_v23 = vmul.f32 %v50_v20, %v49_v21 }
 0x1b0   :  { %v52_v24 = vsub.f32 %v71_v22, %v51_v23 }
 0x1b2   :  { %v53_v25 = vsel %vm24_vm0, %v52_v24, %v16_v4 }
 0x1b3   :  { %v54_v26 = vmul.f32 64.0, %v53_v25 }
 0x1b5   :  { %55 = vst [vmem:[#allocation3] sm:$0xff] %v54_v26 }
 0x1b6   :  { %91 = shalt.err (!%p88_p4)
}
 0x1b7   :  { %65 = dma.vmem_to_hbm [thread:$0]  %s63_s2, 128, %s144_s3, [#allocation4]  }
 0x1b8   :  { %100 = dma.done.wait [#allocation4], 128  }
 0x1b9   :  { %101 = vsyncadd [#allocation4], 4294967168 }
 0x1ba   :  { %69 = vsyncpa [#allocation4], 1 }

</bundles_post_ra>
